<compile_context>
chip_gen: v6e
topology: v6e:2x2x1
jax: 0.10.0
libtpu: 0.0.40
codegen_flags: <defaults>
</compile_context>

<pallas_src>
import functools

import jax
import jax.numpy as jnp
from jax.experimental import pallas as pl
from jax.experimental.pallas import tpu as pltpu


def _ls_ce_tile_kernel(logits_ref, targets_ref, part_ref, *,
                       smoothing, num_classes, n_total, tile_m):
    """One batch tile: (TM, C) logits + (TM, 1) targets -> (1, 128) partial sum."""
    i = pl.program_id(0)

    logits = logits_ref[...].astype(jnp.float32)          # (TM, C)
    tgt = targets_ref[...]                                 # (TM, 1) int32
    tm, c = logits.shape                                   # static block dims

    # Numerically stable log-softmax pieces (all f32, per-row reductions).
    row_max = jnp.max(logits, axis=1, keepdims=True)       # (TM, 1)
    shifted = logits - row_max                              # (TM, C)
    lse = jnp.log(jnp.sum(jnp.exp(shifted), axis=1, keepdims=True))   # (TM, 1)

    # Pieces for the decomposed loss.
    row_sum_shifted = jnp.sum(shifted, axis=1, keepdims=True)          # (TM, 1)
    cls_ids = jax.lax.broadcasted_iota(jnp.int32, (tm, c), dimension=1)
    shifted_at_tgt = jnp.sum(
        jnp.where(cls_ids == tgt, shifted, jnp.float32(0.0)),
        axis=1, keepdims=True)                                          # (TM, 1)

    off = jnp.float32(smoothing / (num_classes - 1))
    on = jnp.float32(1.0 - smoothing)
    c_f = jnp.float32(num_classes)

    # sum_c(log_prob * smoothed) per row, using global num_classes (not block dims).
    row_val = off * (row_sum_shifted - c_f * lse) \
        + (on - off) * (shifted_at_tgt - lse)                           # (TM, 1)

    # Mask out rows past the true batch size (padding rows).
    row_ids = i * tile_m + jax.lax.broadcasted_iota(jnp.int32, (tm, 1), dimension=0)
    row_val = jnp.where(row_ids < n_total, row_val, jnp.float32(0.0))

    partial = jnp.sum(row_val)                                          # scalar
    # Lane-dense (1, 128) store: broadcast the tile partial across all lanes.
    part_ref[...] = jnp.full((1, 128), partial, dtype=jnp.float32)


def cross_entropy_label_smooth(outputs, targets, num_classes=10, smoothing=0.1,
                               tile_m=128):
    """outputs: (N, num_classes) float logits; targets: (N,) int class indices."""
    n = outputs.shape[0]
    assert outputs.shape == (n, num_classes)
    assert num_classes > 1, "smoothing/(num_classes-1) is undefined for 1 class"

    targets2d = targets.astype(jnp.int32).reshape(n, 1)

    # Tile sizing: multiple of 8 sublanes; shrink if a double-buffered tile would
    # blow past a conservative VMEM budget (works on v5e/v6e/v7x defaults).
    tile_m = max(8, min(int(tile_m), ((n + 7) // 8) * 8))
    tile_m = (tile_m // 8) * 8
    vmem_budget = 24 * 1024 * 1024
    while tile_m > 8 and 2 * tile_m * num_classes * 4 > vmem_budget:
        tile_m = max(8, (tile_m // 2 // 8) * 8)

    num_tiles = pl.cdiv(n, tile_m)
    n_pad = num_tiles * tile_m
    if n_pad != n:
        outputs = jnp.pad(outputs, ((0, n_pad - n), (0, 0)))
        targets2d = jnp.pad(targets2d, ((0, n_pad - n), (0, 0)))

    kernel = functools.partial(
        _ls_ce_tile_kernel,
        smoothing=float(smoothing),
        num_classes=int(num_classes),
        n_total=int(n),
        tile_m=int(tile_m),
    )

    tile_bytes = tile_m * num_classes * 4
    vmem_limit = int(min(100 * 1024 * 1024,
                         max(16 * 1024 * 1024, 8 * tile_bytes + (2 << 20))))

    partials = pl.pallas_call(
        kernel,
        out_shape=jax.ShapeDtypeStruct((num_tiles, 128), jnp.float32),
        grid=(num_tiles,),
        in_specs=[
            pl.BlockSpec((tile_m, num_classes), lambda i: (i, 0)),  # logits tile
            pl.BlockSpec((tile_m, 1), lambda i: (i, 0)),            # targets tile
        ],
        out_specs=pl.BlockSpec((1, 128), lambda i: (i, 0)),
        compiler_params=pltpu.CompilerParams(
            dimension_semantics=("parallel",),
            vmem_limit_bytes=vmem_limit,
        ),
    )(outputs, targets2d)

    # Final reduction + 1/N scaling in the wrapper (one value per tile, lane 0).
    return -jnp.sum(partials[:, 0]) / jnp.float32(n)


def _reference(outputs, targets, num_classes=10, smoothing=0.1):
    n = outputs.shape[0]
    smoothed = jnp.full((n, num_classes), smoothing / (num_classes - 1), jnp.float32)
    smoothed = smoothed.at[jnp.arange(n), targets].set(1.0 - smoothing)
    log_prob = jax.nn.log_softmax(outputs.astype(jnp.float32), axis=1)
    return -jnp.sum(log_prob * smoothed) / n


if __name__ == "__main__":
    key = jax.random.PRNGKey(0)
    k1, k2 = jax.random.split(key)

    N, C = 8, 10
    outputs = jax.random.normal(k1, (N, C), dtype=jnp.float32)
    targets = jax.random.randint(k2, (N,), 0, C, dtype=jnp.int32)

    loss = cross_entropy_label_smooth(outputs, targets, num_classes=C, smoothing=0.1)
    jax.block_until_ready(loss)

    ref = _reference(outputs, targets, num_classes=C, smoothing=0.1)
    assert jnp.allclose(loss, ref, atol=1e-5, rtol=1e-5), (loss, ref)

    # Also exercise a batch that is not a multiple of the tile (padding/mask path).
    N2 = 37
    o2 = jax.random.normal(k1, (N2, C), dtype=jnp.float32)
    t2 = jax.random.randint(k2, (N2,), 0, C, dtype=jnp.int32)
    loss2 = cross_entropy_label_smooth(o2, t2, num_classes=C, smoothing=0.1)
    jax.block_until_ready(loss2)
    ref2 = _reference(o2, t2, num_classes=C, smoothing=0.1)
    assert jnp.allclose(loss2, ref2, atol=1e-5, rtol=1e-5), (loss2, ref2)

    print("KERNEL_OK")
</pallas_src>

<mosaic_0001>
module attributes {stable_mosaic.version = 11 : i64} {
  func.func @_ls_ce_tile_kernel(%arg0: i32, %arg1: memref<8x10xf32, #tpu.memory_space<vmem>>, %arg2: memref<8x1xi32, #tpu.memory_space<vmem>>, %arg3: memref<1x128xf32, #tpu.memory_space<vmem>>) attributes {dimension_semantics = [#tpu.dimension_semantics<parallel>], iteration_bounds = array<i64: 1>, scalar_prefetch = 0 : i64, scratch_operands = 0 : i64, tpu.core_type = #tpu.core_type<tc>, window_params = [{transform_indices = @transform_0, window_bounds = array<i64: 8, 10>}, {transform_indices = @transform_1, window_bounds = array<i64: 8, 1>}, {transform_indices = @transform_2, window_bounds = array<i64: 1, 128>}]} {
    %c0 = arith.constant 0 : index
    %c0_0 = arith.constant 0 : index
    %0 = vector.load %arg1[%c0, %c0_0] : memref<8x10xf32, #tpu.memory_space<vmem>>, vector<8x10xf32>
    %c0_1 = arith.constant 0 : index
    %c0_2 = arith.constant 0 : index
    %1 = vector.load %arg2[%c0_1, %c0_2] : memref<8x1xi32, #tpu.memory_space<vmem>>, vector<8x1xi32>
    %cst = arith.constant dense<0xFF800000> : vector<8xf32>
    %2 = vector.multi_reduction <maximumf>, %0, %cst [1] : vector<8x10xf32> to vector<8xf32>
    %3 = vector.shape_cast %2 : vector<8xf32> to vector<8x1xf32>
    %4 = vector.broadcast %3 : vector<8x1xf32> to vector<8x10xf32>
    %5 = arith.subf %0, %4 : vector<8x10xf32>
    %6 = math.exp %5 : vector<8x10xf32>
    %cst_3 = arith.constant dense<0.000000e+00> : vector<8xf32>
    %7 = vector.multi_reduction <add>, %6, %cst_3 [1] : vector<8x10xf32> to vector<8xf32>
    %8 = vector.shape_cast %7 : vector<8xf32> to vector<8x1xf32>
    %9 = math.log %8 : vector<8x1xf32>
    %cst_4 = arith.constant dense<0.000000e+00> : vector<8xf32>
    %10 = vector.multi_reduction <add>, %5, %cst_4 [1] : vector<8x10xf32> to vector<8xf32>
    %11 = vector.shape_cast %10 : vector<8xf32> to vector<8x1xf32>
    %12 = tpu.iota {dimensions = array<i32: 1>} : vector<8x10xi32>
    %13 = vector.broadcast %1 : vector<8x1xi32> to vector<8x10xi32>
    %14 = arith.cmpi eq, %12, %13 : vector<8x10xi32>
    %cst_5 = arith.constant 0.000000e+00 : f32
    %15 = vector.broadcast %cst_5 : f32 to vector<8x10xf32>
    %16 = arith.select %14, %5, %15 : vector<8x10xi1>, vector<8x10xf32>
    %cst_6 = arith.constant dense<0.000000e+00> : vector<8xf32>
    %17 = vector.multi_reduction <add>, %16, %cst_6 [1] : vector<8x10xf32> to vector<8xf32>
    %18 = vector.shape_cast %17 : vector<8xf32> to vector<8x1xf32>
    %cst_7 = arith.constant 1.000000e+01 : f32
    %19 = vector.broadcast %cst_7 : f32 to vector<8x1xf32>
    %20 = arith.mulf %19, %9 : vector<8x1xf32>
    %21 = arith.subf %11, %20 : vector<8x1xf32>
    %cst_8 = arith.constant 0.0111111114 : f32
    %22 = vector.broadcast %cst_8 : f32 to vector<8x1xf32>
    %23 = arith.mulf %22, %21 : vector<8x1xf32>
    %cst_9 = arith.constant 0.899999976 : f32
    %cst_10 = arith.constant 0.0111111114 : f32
    %24 = arith.subf %cst_9, %cst_10 : f32
    %25 = arith.subf %18, %9 : vector<8x1xf32>
    %26 = vector.broadcast %24 : f32 to vector<8x1xf32>
    %27 = arith.mulf %26, %25 : vector<8x1xf32>
    %28 = arith.addf %23, %27 : vector<8x1xf32>
    %c8_i32 = arith.constant 8 : i32
    %29 = arith.muli %arg0, %c8_i32 : i32
    %30 = tpu.iota {dimensions = array<i32: 0>} : vector<8x1xi32>
    %31 = vector.broadcast %29 : i32 to vector<8x1xi32>
    %32 = arith.addi %31, %30 : vector<8x1xi32>
    %c8_i32_11 = arith.constant 8 : i32
    %33 = vector.broadcast %c8_i32_11 : i32 to vector<8x1xi32>
    %34 = arith.cmpi slt, %32, %33 : vector<8x1xi32>
    %cst_12 = arith.constant 0.000000e+00 : f32
    %35 = vector.broadcast %cst_12 : f32 to vector<8x1xf32>
    %36 = arith.select %34, %28, %35 : vector<8x1xi1>, vector<8x1xf32>
    %37 = vector.shape_cast %36 : vector<8x1xf32> to vector<1x8x1xf32>
    %cst_13 = arith.constant dense<0.000000e+00> : vector<1xf32>
    %38 = vector.multi_reduction <add>, %37, %cst_13 [1, 2] : vector<1x8x1xf32> to vector<1xf32>
    %39 = vector.shape_cast %38 : vector<1xf32> to vector<1x1x1xf32>
    %40 = vector.extract %39[0, 0, 0] : f32 from vector<1x1x1xf32>
    %41 = vector.broadcast %40 : f32 to vector<1x128xf32>
    %c0_14 = arith.constant 0 : index
    %c0_15 = arith.constant 0 : index
    %42 = vector.load %arg3[%c0_14, %c0_15] : memref<1x128xf32, #tpu.memory_space<vmem>>, vector<1x128xf32>
    tpu.vector_store %arg3[%c0_14, %c0_15], %41 {strides = array<i32>} : memref<1x128xf32, #tpu.memory_space<vmem>>, vector<1x128xf32>,
    return
  }
  func.func @transform_0(%arg0: i32) -> (i32, i32) {
    %c0_i32 = arith.constant 0 : i32
    %c0_i32_0 = arith.constant 0 : i32
    return %arg0, %c0_i32 : i32, i32
  }
  func.func @transform_1(%arg0: i32) -> (i32, i32) {
    %c0_i32 = arith.constant 0 : i32
    %c0_i32_0 = arith.constant 0 : i32
    return %arg0, %c0_i32 : i32, i32
  }
  func.func @transform_2(%arg0: i32) -> (i32, i32) {
    %c0_i32 = arith.constant 0 : i32
    %c0_i32_0 = arith.constant 0 : i32
    return %arg0, %c0_i32 : i32, i32
  }
}

</mosaic_0001>

<bundles_post_ra>
// kernel: tpu_custom_call.1
= control target key start
LH: loop header
LB: loop body
LE: loop exit
PB: predicated region body
PF: predicated region fallthrough
CT: control target
= control target key end

     0   :  { %vm14_vm0 = vcmask 80896   ;;  %s140_s0 = inlined_call_operand.vmem [shape: f32[8,10], index: 0, kind: input, shape index: {}]   ;;  %s141_s1 = inlined_call_operand.vmem [shape: s32[8,1], index: 1, kind: input, shape index: {}]   ;;  %s142_s2 = inlined_call_operand.hbm [shape: f32[1,128], index: 2, kind: output, shape index: {}]  }
   0x1   :  { %v12_v0 = vld [vmem:[%s140_s0] sm:$0xff] }
   0x2   :  { %7 = vsyncpa [#allocation3], 0  ;;  %v15_v1 = vsel %vm14_vm0, %v12_v0, -inf  ;;  %v110_v2 = vmov 0   ;;  %v13_v3 = vld [vmem:[%s141_s1] sm:$0xff]  ;;  %v29_v7 = vlaneseq  ;;  %vm52_vm2 = vcmask 7168  }
   0x3   :  { %83 = vset.pattern.permute.xlu0 %v110_v2  ;;  %s111_s0 = smov [#allocation2]  }
   0x4   :  { %16 = vmax.xlane.f32.xlu0 %v15_v1  ;;  %v30_v8 = vand.u32 127, %v29_v7  ;;  %s71_s1 = sshll.u32 %s111_s0, 4  ;;  %s72_s1 = int_to_ptr.vmem [resolvable:$true] %s71_s1 }
   0x5   :  { %s88_s14 = scalar_lea.vmem %s72_s1, 16  ;;  %s92_s15 = scalar_lea.vmem %s72_s1, 32 }
   0x6   :  { %p89_p0 = scmp.ne.s32.totalorder %s72_s1, %s88_s14  ;;  %p93_p1 = scmp.lt.s32.totalorder %s72_s1, %s72_s1 }
   0x7   :  { %p94_p2 = scmp.lt.s32.totalorder %s92_s15, %s88_s14 }
   0x9   :  { %p95_p3 = por %p94_p2, %p93_p1 }
   0xb   :  { %p96_p4 = pnand %p95_p3, %p89_p0 }
  0x1a   :  { %32 = vperm.xlu0 %83, %v13_v3  }
  0x8d   :  { %v17_v4 = vpop.xlane.xlu0 %16 }
  0x8e   :  { %v18_v5 = vsub.f32 %v12_v0, %v17_v4 }
  0x90   :  { %v19_v6 = vmul.f32 1.442695, %v18_v5  ;;  %v26_v12 = vsel %vm14_vm0, %v18_v5, 0.0 }
  0x92   :  { %84 = vpow2.f32 %v19_v6 }
  0x95   :  { %v33_v10 = vpop.permute.xlu0 %32 }
  0x96   :  { %vm34_vm1 = vcmp.eq.s32.totalorder %v30_v8, %v33_v10 }
  0x97   :  { %v35_v13 = vsel %vm34_vm1, %v18_v5, 0.0 }
  0x98   :  { %v36_v14 = vsel %vm14_vm0, %v35_v13, 0.0 }
  0x9f   :  { %v85_v9 = vpop.eup %84 }
  0xa0   :  { %v21_v11 = vsel %vm14_vm0, %v85_v9, 0.0 }
  0xa1   :  { %22 = vadd.xlane.f32.xlu1 %v21_v11 }
  0xa5   :  { %27 = vadd.xlane.f32.xlu1 %v26_v12 }
  0xa9   :  { %37 = vadd.xlane.f32.xlu1 %v36_v14 }
 0x12a   :  { %v23_v15 = vpop.xlane.xlu1 %22 }
 0x12b   :  { %86 = vlog2.f32 %v23_v15 }
 0x12e   :  { %v28_v16 = vpop.xlane.xlu1 %27 }
 0x132   :  { %v38_v19 = vpop.xlane.xlu1 %37 }
 0x138   :  { %v87_v17 = vpop.eup %86 }
 0x139   :  { %v25_v18 = vmul.f32 0.6931472, %v87_v17 }
 0x13b   :  { %v39_v20 = vmul.f32 10.0, %v25_v18  ;;  %v42_v21 = vsub.f32 %v38_v19, %v25_v18 }
 0x13d   :  { %v40_v22 = vsub.f32 %v28_v16, %v39_v20  ;;  %v43_v24 = vmul.f32 0.88888884, %v42_v21 }
 0x13f   :  { %v41_v23 = vmul.f32 0.011111111, %v40_v22 }
 0x141   :  { %v44_v25 = vadd.f32 %v43_v24, %v41_v23 }
 0x143   :  { %v53_v26 = vsel %vm52_vm2, %v44_v25, 0.0 }
 0x144   :  { %54 = vadd.xlane.f32.xlu1 %v53_v26 }
 0x1cd   :  { %v55_v27 = vpop.xlane.xlu1 %54 }
 0x1ce   :  { %v56_v28 = vrot.slane %v55_v27, 4 }
 0x1d0   :  { %v57_v29 = vadd.f32 %v56_v28, %v55_v27 }
 0x1d2   :  { %v58_v30 = vrot.slane %v57_v29, 2 }
 0x1d4   :  { %v59_v31 = vadd.f32 %v58_v30, %v57_v29 }
 0x1d6   :  { %v60_v32 = vrot.slane %v59_v31, 1 }
 0x1d8   :  { %v61_v33 = vadd.f32 %v60_v32, %v59_v31 }
 0x1da   :  { %79 = vpush %v61_v33 }
 0x20b   :  { %s80_s13 = spop %79 }
 0x20c   :  { %v63_v34 = vstv %s80_s13 }
 0x20d   :  { %64 = vst [vmem:[#allocation2] sm:$0x1] %v63_v34 }
 0x20e   :  { %99 = shalt.err (!%p96_p4)
}
 0x20f   :  { %74 = dma.vmem_to_hbm [thread:$0]  %s72_s1, 16, %s142_s2, [#allocation3]  }
 0x210   :  { %108 = dma.done.wait [#allocation3], 16  }
 0x211   :  { %109 = vsyncadd [#allocation3], 4294967280 }
 0x212   :  { %78 = vsyncpa [#allocation3], 1 }

</bundles_post_ra>
